<compile_context>
chip_gen: v5e
topology: v5e:2x2
jax: 0.10.0
libtpu: 0.0.40
codegen_flags: <defaults>
</compile_context>

<pallas_src>
import math
import functools

import jax
import jax.numpy as jnp
import numpy as np
from jax.experimental import pallas as pl
from jax.experimental.pallas import tpu as pltpu


def _mha_flash_kernel(q_ref, k_ref, v_ref,
                      wq_ref, bq_ref, wk_ref, bk_ref, wv_ref, bv_ref,
                      wo_ref, bo_ref,
                      o_ref,
                      qh_s, m_s, l_s, acc_s,
                      *, n_heads):
    """grid = (batch, q_tile, kv_tile); kv_tile is the innermost (arbitrary) axis."""
    H = n_heads
    ki = pl.program_id(2)
    n_kv = pl.num_programs(2)

    # ---- per-(b, q_tile) init: project Q once, reset online-softmax state ----
    @pl.when(ki == 0)
    def _init():
        x_q = q_ref[0].astype(jnp.bfloat16)                    # (TQ, D)
        tq, d_model = x_q.shape
        x_qb = jnp.broadcast_to(x_q[None], (H, tq, d_model))   # (H, TQ, D)
        # scale 1/sqrt(d_k) is folded into wq/bq in the wrapper
        qh = jnp.einsum("hqD,hDd->hqd", x_qb, wq_ref[...],
                        preferred_element_type=jnp.float32) + bq_ref[...]
        qh_s[...] = qh.astype(qh_s.dtype)                      # (H, TQ, d_k) bf16
        m_s[...] = jnp.full_like(m_s, -jnp.inf)
        l_s[...] = jnp.zeros_like(l_s)
        acc_s[...] = jnp.zeros_like(acc_s)

    # ---- project current K / V tile (head-batched, bf16 MXU, f32 accumulate) ----
    x_k = k_ref[0].astype(jnp.bfloat16)                        # (TKV, D)
    x_v = v_ref[0].astype(jnp.bfloat16)
    tkv, d_model = x_k.shape
    x_kb = jnp.broadcast_to(x_k[None], (H, tkv, d_model))
    x_vb = jnp.broadcast_to(x_v[None], (H, tkv, d_model))
    kh = (jnp.einsum("hkD,hDd->hkd", x_kb, wk_ref[...],
                     preferred_element_type=jnp.float32) + bk_ref[...]
          ).astype(jnp.bfloat16)                               # (H, TKV, d_k)
    vh = (jnp.einsum("hkD,hDd->hkd", x_vb, wv_ref[...],
                     preferred_element_type=jnp.float32) + bv_ref[...]
          ).astype(jnp.bfloat16)                               # (H, TKV, d_k)

    # ---- online softmax over the KV tiles ----
    s = jnp.einsum("hqd,hkd->hqk", qh_s[...], kh,
                   preferred_element_type=jnp.float32)         # (H, TQ, TKV) f32

    m_prev = m_s[...]
    m_new = jnp.maximum(m_prev, s.max(axis=-1, keepdims=True))
    alpha = jnp.exp(m_prev - m_new)
    p = jnp.exp(s - m_new)
    l_s[...] = alpha * l_s[...] + p.sum(axis=-1, keepdims=True)
    acc_s[...] = alpha * acc_s[...] + jnp.einsum(
        "hqk,hkd->hqd", p.astype(jnp.bfloat16), vh,
        preferred_element_type=jnp.float32)
    m_s[...] = m_new

    # ---- finalize: normalize, output projection (sum of per-head partials) ----
    @pl.when(ki == n_kv - 1)
    def _finalize():
        inv_l = pl.reciprocal(l_s[...], approx=True)           # EUP, off the VALU path
        out_h = (acc_s[...] * inv_l).astype(jnp.bfloat16)      # (H, TQ, d_k)
        # concat(heads) @ Wo  ==  sum_h out_h[h] @ Wo[h*d_k:(h+1)*d_k, :]
        partial = jnp.einsum("hqd,hdD->hqD", out_h, wo_ref[...],
                             preferred_element_type=jnp.float32)   # (H, TQ, D)
        out = jnp.sum(partial, axis=0) + bo_ref[...]               # (TQ, D)
        o_ref[0] = out.astype(o_ref.dtype)


def _pick_tile(s):
    for c in (512, 256, 128):
        if s % c == 0:
            return c
    return s


def multi_head_attention(q, k, v, params, *, n_heads, tile_q=None, tile_kv=None):
    """q, k, v: (B, S, D) float32. params: flat (D, D) weights / (1, D) biases."""
    B, S, D = q.shape
    assert D % n_heads == 0, "d_model must be divisible by n_heads"
    d_k = D // n_heads
    tile_q = tile_q or _pick_tile(S)
    tile_kv = tile_kv or _pick_tile(S)
    assert S % tile_q == 0 and S % tile_kv == 0

    scale = 1.0 / math.sqrt(d_k)

    # --- head-split weight layouts (done once, outside the kernel) ---
    def split_in(w):            # (D, D) -> (H, D, d_k): per-head input-proj slabs
        return w.reshape(D, n_heads, d_k).transpose(1, 0, 2)

    def split_bias(b):          # (1, D) -> (H, 1, d_k)
        return b.reshape(n_heads, d_k)[:, None, :]

    wq_h = (split_in(params["wq"]) * scale).astype(jnp.bfloat16)
    wk_h = split_in(params["wk"]).astype(jnp.bfloat16)
    wv_h = split_in(params["wv"]).astype(jnp.bfloat16)
    wo_h = params["wo"].reshape(n_heads, d_k, D).astype(jnp.bfloat16)
    bq_h = split_bias(params["bq"]) * scale                    # f32
    bk_h = split_bias(params["bk"])
    bv_h = split_bias(params["bv"])
    bo = params["bo"]                                          # (1, D) f32

    kernel = functools.partial(_mha_flash_kernel, n_heads=n_heads)

    grid = (B, S // tile_q, S // tile_kv)

    q_spec = pl.BlockSpec((1, tile_q, D), lambda b, qi, ki: (b, qi, 0))
    kv_spec = pl.BlockSpec((1, tile_kv, D), lambda b, qi, ki: (b, ki, 0))
    w_in_spec = pl.BlockSpec((n_heads, D, d_k), lambda b, qi, ki: (0, 0, 0))
    b_in_spec = pl.BlockSpec((n_heads, 1, d_k), lambda b, qi, ki: (0, 0, 0))
    wo_spec = pl.BlockSpec((n_heads, d_k, D), lambda b, qi, ki: (0, 0, 0))
    bo_spec = pl.BlockSpec((1, D), lambda b, qi, ki: (0, 0))
    out_spec = pl.BlockSpec((1, tile_q, D), lambda b, qi, ki: (b, qi, 0))

    return pl.pallas_call(
        kernel,
        out_shape=jax.ShapeDtypeStruct((B, S, D), q.dtype),
        grid_spec=pltpu.PrefetchScalarGridSpec(
            num_scalar_prefetch=0,
            grid=grid,
            in_specs=[q_spec, kv_spec, kv_spec,
                      w_in_spec, b_in_spec,      # Wq, bq (scale folded in)
                      w_in_spec, b_in_spec,      # Wk, bk
                      w_in_spec, b_in_spec,      # Wv, bv
                      wo_spec, bo_spec],         # Wo, bo
            out_specs=out_spec,
            scratch_shapes=[
                pltpu.VMEM((n_heads, tile_q, d_k), jnp.bfloat16),  # projected Q
                pltpu.VMEM((n_heads, tile_q, 1), jnp.float32),     # running max
                pltpu.VMEM((n_heads, tile_q, 1), jnp.float32),     # running sum
                pltpu.VMEM((n_heads, tile_q, d_k), jnp.float32),   # output acc
            ],
        ),
        compiler_params=pltpu.CompilerParams(
            dimension_semantics=("parallel", "parallel", "arbitrary"),
            vmem_limit_bytes=32 * 1024 * 1024,
        ),
    )(q, k, v, wq_h, bq_h, wk_h, bk_h, wv_h, bv_h, wo_h, bo)


def _reference_mha(q, k, v, params, *, n_heads):
    """Pure-JAX f32 reference mirroring the PyTorch forward exactly."""
    B, S, D = q.shape
    d_k = D // n_heads

    def lin(x, w, b):
        return x @ w + b                       # w stored (in, out)

    qp = lin(q, params["wq"], params["bq"]).reshape(B, S, n_heads, d_k).transpose(0, 2, 1, 3)
    kp = lin(k, params["wk"], params["bk"]).reshape(B, S, n_heads, d_k).transpose(0, 2, 1, 3)
    vp = lin(v, params["wv"], params["bv"]).reshape(B, S, n_heads, d_k).transpose(0, 2, 1, 3)

    scores = jnp.einsum("bhqd,bhkd->bhqk", qp, kp) / math.sqrt(d_k)
    weights = jax.nn.softmax(scores, axis=-1)
    out = jnp.einsum("bhqk,bhkd->bhqd", weights, vp)
    out = out.transpose(0, 2, 1, 3).reshape(B, S, D)
    return lin(out, params["wo"], params["bo"])


def _init_params(key, d_model):
    """Deterministic synthetic parameters (PyTorch-Linear-like uniform init)."""
    keys = jax.random.split(key, 8)
    bound = 1.0 / math.sqrt(d_model)

    def u(kk, shape):
        return jax.random.uniform(kk, shape, jnp.float32, -bound, bound)

    return {
        "wq": u(keys[0], (d_model, d_model)), "bq": u(keys[1], (1, d_model)),
        "wk": u(keys[2], (d_model, d_model)), "bk": u(keys[3], (1, d_model)),
        "wv": u(keys[4], (d_model, d_model)), "bv": u(keys[5], (1, d_model)),
        "wo": u(keys[6], (d_model, d_model)), "bo": u(keys[7], (1, d_model)),
    }


if __name__ == "__main__":
    def run_case(B, S, D, H, seed, tile_q=None, tile_kv=None):
        root = jax.random.PRNGKey(seed)
        k_q, k_k, k_v, k_p = jax.random.split(root, 4)
        q = jax.random.normal(k_q, (B, S, D), jnp.float32)
        k = jax.random.normal(k_k, (B, S, D), jnp.float32)
        v = jax.random.normal(k_v, (B, S, D), jnp.float32)
        params = _init_params(k_p, D)

        out = jax.block_until_ready(
            multi_head_attention(q, k, v, params, n_heads=H,
                                 tile_q=tile_q, tile_kv=tile_kv))
        ref = _reference_mha(q, k, v, params, n_heads=H)

        out_np, ref_np = np.asarray(out), np.asarray(ref)
        # bf16 MXU operands + approx reciprocal -> loosened pointwise tolerance,
        # plus a global relative-error check that catches any logic error.
        np.testing.assert_allclose(out_np, ref_np, rtol=5e-2, atol=2e-2)
        rel = np.linalg.norm(out_np - ref_np) / (np.linalg.norm(ref_np) + 1e-12)
        assert rel < 3e-2, f"global relative error too large: {rel}"

    # Small shape from the module spec: batch=2, seq=8, d_model=32, heads=4.
    run_case(2, 8, 32, 4, seed=0)
    # Medium shape exercising the flash Q/KV tiling + online softmax (2x2 tiles).
    run_case(2, 256, 128, 4, seed=1, tile_q=128, tile_kv=128)

    print("KERNEL_OK")
</pallas_src>

<mosaic_0001>
module attributes {stable_mosaic.version = 11 : i64} {
  func.func @_mha_flash_kernel(%arg0: i32, %arg1: i32, %arg2: i32, %arg3: memref<1x8x32xf32, #tpu.memory_space<vmem>>, %arg4: memref<1x8x32xf32, #tpu.memory_space<vmem>>, %arg5: memref<1x8x32xf32, #tpu.memory_space<vmem>>, %arg6: memref<4x32x8xbf16, #tpu.memory_space<vmem>>, %arg7: memref<4x1x8xf32, #tpu.memory_space<vmem>>, %arg8: memref<4x32x8xbf16, #tpu.memory_space<vmem>>, %arg9: memref<4x1x8xf32, #tpu.memory_space<vmem>>, %arg10: memref<4x32x8xbf16, #tpu.memory_space<vmem>>, %arg11: memref<4x1x8xf32, #tpu.memory_space<vmem>>, %arg12: memref<4x8x32xbf16, #tpu.memory_space<vmem>>, %arg13: memref<1x32xf32, #tpu.memory_space<vmem>>, %arg14: memref<1x8x32xf32, #tpu.memory_space<vmem>>, %arg15: memref<4x8x8xbf16, #tpu.memory_space<vmem>>, %arg16: memref<4x8x1xf32, #tpu.memory_space<vmem>>, %arg17: memref<4x8x1xf32, #tpu.memory_space<vmem>>, %arg18: memref<4x8x8xf32, #tpu.memory_space<vmem>>) attributes {dimension_semantics = [#tpu.dimension_semantics<parallel>, #tpu.dimension_semantics<parallel>, #tpu.dimension_semantics<arbitrary>], iteration_bounds = array<i64: 2, 1, 1>, scalar_prefetch = 0 : i64, scratch_operands = 4 : i64, tpu.core_type = #tpu.core_type<tc>, window_params = [{transform_indices = @transform_0, window_bounds = array<i64: 1, 8, 32>}, {transform_indices = @transform_1, window_bounds = array<i64: 1, 8, 32>}, {transform_indices = @transform_2, window_bounds = array<i64: 1, 8, 32>}, {pipeline_mode = #tpu.pipeline_mode<synchronous>, transform_indices = @transform_3, window_bounds = array<i64: 4, 32, 8>}, {pipeline_mode = #tpu.pipeline_mode<synchronous>, transform_indices = @transform_4, window_bounds = array<i64: 4, 1, 8>}, {pipeline_mode = #tpu.pipeline_mode<synchronous>, transform_indices = @transform_5, window_bounds = array<i64: 4, 32, 8>}, {pipeline_mode = #tpu.pipeline_mode<synchronous>, transform_indices = @transform_6, window_bounds = array<i64: 4, 1, 8>}, {pipeline_mode = #tpu.pipeline_mode<synchronous>, transform_indices = @transform_7, window_bounds = array<i64: 4, 32, 8>}, {pipeline_mode = #tpu.pipeline_mode<synchronous>, transform_indices = @transform_8, window_bounds = array<i64: 4, 1, 8>}, {pipeline_mode = #tpu.pipeline_mode<synchronous>, transform_indices = @transform_9, window_bounds = array<i64: 4, 8, 32>}, {pipeline_mode = #tpu.pipeline_mode<synchronous>, transform_indices = @transform_10, window_bounds = array<i64: 1, 32>}, {transform_indices = @transform_11, window_bounds = array<i64: 1, 8, 32>}]} {
    %c0_i32 = arith.constant 0 : i32
    %0 = arith.cmpi eq, %arg2, %c0_i32 : i32
    %1 = arith.extui %0 : i1 to i32
    %c0_i32_0 = arith.constant 0 : i32
    %2 = arith.cmpi ne, %1, %c0_i32_0 : i32
    scf.if %2 {
      %c0_46 = arith.constant 0 : index
      %c0_47 = arith.constant 0 : index
      %c0_48 = arith.constant 0 : index
      %55 = vector.load %arg3[%c0_46, %c0_47, %c0_48] : memref<1x8x32xf32, #tpu.memory_space<vmem>>, vector<1x8x32xf32>
      %56 = vector.shape_cast %55 : vector<1x8x32xf32> to vector<8x32xf32>
      %57 = arith.truncf %56 : vector<8x32xf32> to vector<8x32xbf16>
      %58 = vector.shape_cast %57 : vector<8x32xbf16> to vector<1x8x32xbf16>
      %59 = vector.shape_cast %58 : vector<1x8x32xbf16> to vector<1x8x32xbf16>
      %60 = vector.broadcast %59 : vector<1x8x32xbf16> to vector<4x8x32xbf16>
      %c0_49 = arith.constant 0 : index
      %c0_50 = arith.constant 0 : index
      %c0_51 = arith.constant 0 : index
      %61 = vector.load %arg6[%c0_49, %c0_50, %c0_51] : memref<4x32x8xbf16, #tpu.memory_space<vmem>>, vector<4x32x8xbf16>
      "tpu.trace_start"() <{level = 10 : i32, message = "hqD,hDd->hqd"}> : () -> ()
      %cst_52 = arith.constant dense<0.000000e+00> : vector<4x8x8xf32>
      %62 = tpu.matmul %60, %61, %cst_52 {dimension_numbers = #tpu.dot_dimension_numbers<[2], [1], [1], [2], [0, 0, 0, 1, 1, 2], [0], [0]>} : vector<4x8x32xbf16>, vector<4x32x8xbf16>, vector<4x8x8xf32> -> vector<4x8x8xf32>
      "tpu.trace_stop"() : () -> ()
      %c0_53 = arith.constant 0 : index
      %c0_54 = arith.constant 0 : index
      %c0_55 = arith.constant 0 : index
      %63 = vector.load %arg7[%c0_53, %c0_54, %c0_55] : memref<4x1x8xf32, #tpu.memory_space<vmem>>, vector<4x1x8xf32>
      %64 = vector.broadcast %63 : vector<4x1x8xf32> to vector<4x8x8xf32>
      %65 = arith.addf %62, %64 : vector<4x8x8xf32>
      %66 = arith.truncf %65 : vector<4x8x8xf32> to vector<4x8x8xbf16>
      %c0_56 = arith.constant 0 : index
      %c0_57 = arith.constant 0 : index
      %c0_58 = arith.constant 0 : index
      %67 = vector.load %arg15[%c0_56, %c0_57, %c0_58] : memref<4x8x8xbf16, #tpu.memory_space<vmem>>, vector<4x8x8xbf16>
      tpu.vector_store %arg15[%c0_56, %c0_57, %c0_58], %66 {strides = array<i32>} : memref<4x8x8xbf16, #tpu.memory_space<vmem>>, vector<4x8x8xbf16>,
      %cst_59 = arith.constant 0xFF800000 : f32
      %68 = vector.broadcast %cst_59 : f32 to vector<4x8x1xf32>
      %c0_60 = arith.constant 0 : index
      %c0_61 = arith.constant 0 : index
      %c0_62 = arith.constant 0 : index
      %69 = vector.load %arg16[%c0_60, %c0_61, %c0_62] : memref<4x8x1xf32, #tpu.memory_space<vmem>>, vector<4x8x1xf32>
      tpu.vector_store %arg16[%c0_60, %c0_61, %c0_62], %68 {strides = array<i32>} : memref<4x8x1xf32, #tpu.memory_space<vmem>>, vector<4x8x1xf32>,
      %cst_63 = arith.constant 0.000000e+00 : f32
      %70 = vector.broadcast %cst_63 : f32 to vector<4x8x1xf32>
      %c0_64 = arith.constant 0 : index
      %c0_65 = arith.constant 0 : index
      %c0_66 = arith.constant 0 : index
      %71 = vector.load %arg17[%c0_64, %c0_65, %c0_66] : memref<4x8x1xf32, #tpu.memory_space<vmem>>, vector<4x8x1xf32>
      tpu.vector_store %arg17[%c0_64, %c0_65, %c0_66], %70 {strides = array<i32>} : memref<4x8x1xf32, #tpu.memory_space<vmem>>, vector<4x8x1xf32>,
      %cst_67 = arith.constant 0.000000e+00 : f32
      %72 = vector.broadcast %cst_67 : f32 to vector<4x8x8xf32>
      %c0_68 = arith.constant 0 : index
      %c0_69 = arith.constant 0 : index
      %c0_70 = arith.constant 0 : index
      %73 = vector.load %arg18[%c0_68, %c0_69, %c0_70] : memref<4x8x8xf32, #tpu.memory_space<vmem>>, vector<4x8x8xf32>
      tpu.vector_store %arg18[%c0_68, %c0_69, %c0_70], %72 {strides = array<i32>} : memref<4x8x8xf32, #tpu.memory_space<vmem>>, vector<4x8x8xf32>,
    } else {
    }
    %c0 = arith.constant 0 : index
    %c0_1 = arith.constant 0 : index
    %c0_2 = arith.constant 0 : index
    %3 = vector.load %arg4[%c0, %c0_1, %c0_2] : memref<1x8x32xf32, #tpu.memory_space<vmem>>, vector<1x8x32xf32>
    %4 = vector.shape_cast %3 : vector<1x8x32xf32> to vector<8x32xf32>
    %5 = arith.truncf %4 : vector<8x32xf32> to vector<8x32xbf16>
    %c0_3 = arith.constant 0 : index
    %c0_4 = arith.constant 0 : index
    %c0_5 = arith.constant 0 : index
    %6 = vector.load %arg5[%c0_3, %c0_4, %c0_5] : memref<1x8x32xf32, #tpu.memory_space<vmem>>, vector<1x8x32xf32>
    %7 = vector.shape_cast %6 : vector<1x8x32xf32> to vector<8x32xf32>
    %8 = arith.truncf %7 : vector<8x32xf32> to vector<8x32xbf16>
    %9 = vector.shape_cast %5 : vector<8x32xbf16> to vector<1x8x32xbf16>
    %10 = vector.shape_cast %9 : vector<1x8x32xbf16> to vector<1x8x32xbf16>
    %11 = vector.broadcast %10 : vector<1x8x32xbf16> to vector<4x8x32xbf16>
    %12 = vector.shape_cast %8 : vector<8x32xbf16> to vector<1x8x32xbf16>
    %13 = vector.shape_cast %12 : vector<1x8x32xbf16> to vector<1x8x32xbf16>
    %14 = vector.broadcast %13 : vector<1x8x32xbf16> to vector<4x8x32xbf16>
    %c0_6 = arith.constant 0 : index
    %c0_7 = arith.constant 0 : index
    %c0_8 = arith.constant 0 : index
    %15 = vector.load %arg8[%c0_6, %c0_7, %c0_8] : memref<4x32x8xbf16, #tpu.memory_space<vmem>>, vector<4x32x8xbf16>
    "tpu.trace_start"() <{level = 10 : i32, message = "hkD,hDd->hkd"}> : () -> ()
    %cst = arith.constant dense<0.000000e+00> : vector<4x8x8xf32>
    %16 = tpu.matmul %11, %15, %cst {dimension_numbers = #tpu.dot_dimension_numbers<[2], [1], [1], [2], [0, 0, 0, 1, 1, 2], [0], [0]>} : vector<4x8x32xbf16>, vector<4x32x8xbf16>, vector<4x8x8xf32> -> vector<4x8x8xf32>
    "tpu.trace_stop"() : () -> ()
    %c0_9 = arith.constant 0 : index
    %c0_10 = arith.constant 0 : index
    %c0_11 = arith.constant 0 : index
    %17 = vector.load %arg9[%c0_9, %c0_10, %c0_11] : memref<4x1x8xf32, #tpu.memory_space<vmem>>, vector<4x1x8xf32>
    %18 = vector.broadcast %17 : vector<4x1x8xf32> to vector<4x8x8xf32>
    %19 = arith.addf %16, %18 : vector<4x8x8xf32>
    %20 = arith.truncf %19 : vector<4x8x8xf32> to vector<4x8x8xbf16>
    %c0_12 = arith.constant 0 : index
    %c0_13 = arith.constant 0 : index
    %c0_14 = arith.constant 0 : index
    %21 = vector.load %arg10[%c0_12, %c0_13, %c0_14] : memref<4x32x8xbf16, #tpu.memory_space<vmem>>, vector<4x32x8xbf16>
    "tpu.trace_start"() <{level = 10 : i32, message = "hkD,hDd->hkd"}> : () -> ()
    %cst_15 = arith.constant dense<0.000000e+00> : vector<4x8x8xf32>
    %22 = tpu.matmul %14, %21, %cst_15 {dimension_numbers = #tpu.dot_dimension_numbers<[2], [1], [1], [2], [0, 0, 0, 1, 1, 2], [0], [0]>} : vector<4x8x32xbf16>, vector<4x32x8xbf16>, vector<4x8x8xf32> -> vector<4x8x8xf32>
    "tpu.trace_stop"() : () -> ()
    %c0_16 = arith.constant 0 : index
    %c0_17 = arith.constant 0 : index
    %c0_18 = arith.constant 0 : index
    %23 = vector.load %arg11[%c0_16, %c0_17, %c0_18] : memref<4x1x8xf32, #tpu.memory_space<vmem>>, vector<4x1x8xf32>
    %24 = vector.broadcast %23 : vector<4x1x8xf32> to vector<4x8x8xf32>
    %25 = arith.addf %22, %24 : vector<4x8x8xf32>
    %26 = arith.truncf %25 : vector<4x8x8xf32> to vector<4x8x8xbf16>
    %c0_19 = arith.constant 0 : index
    %c0_20 = arith.constant 0 : index
    %c0_21 = arith.constant 0 : index
    %27 = vector.load %arg15[%c0_19, %c0_20, %c0_21] : memref<4x8x8xbf16, #tpu.memory_space<vmem>>, vector<4x8x8xbf16>
    "tpu.trace_start"() <{level = 10 : i32, message = "hqd,hkd->hqk"}> : () -> ()
    %cst_22 = arith.constant dense<0.000000e+00> : vector<4x8x8xf32>
    %28 = tpu.matmul %27, %20, %cst_22 {dimension_numbers = #tpu.dot_dimension_numbers<[2], [2], [1], [1], [0, 0, 0, 1, 1, 1], [0], [0]>} : vector<4x8x8xbf16>, vector<4x8x8xbf16>, vector<4x8x8xf32> -> vector<4x8x8xf32>
    "tpu.trace_stop"() : () -> ()
    %c0_23 = arith.constant 0 : index
    %c0_24 = arith.constant 0 : index
    %c0_25 = arith.constant 0 : index
    %29 = vector.load %arg16[%c0_23, %c0_24, %c0_25] : memref<4x8x1xf32, #tpu.memory_space<vmem>>, vector<4x8x1xf32>
    %cst_26 = arith.constant dense<0xFF800000> : vector<4x8xf32>
    %30 = vector.multi_reduction <maximumf>, %28, %cst_26 [2] : vector<4x8x8xf32> to vector<4x8xf32>
    %31 = vector.shape_cast %30 : vector<4x8xf32> to vector<4x8x1xf32>
    %32 = arith.maximumf %29, %31 : vector<4x8x1xf32>
    %33 = arith.subf %29, %32 : vector<4x8x1xf32>
    %34 = math.exp %33 : vector<4x8x1xf32>
    %35 = vector.broadcast %32 : vector<4x8x1xf32> to vector<4x8x8xf32>
    %36 = arith.subf %28, %35 : vector<4x8x8xf32>
    %37 = math.exp %36 : vector<4x8x8xf32>
    %c0_27 = arith.constant 0 : index
    %c0_28 = arith.constant 0 : index
    %c0_29 = arith.constant 0 : index
    %38 = vector.load %arg17[%c0_27, %c0_28, %c0_29] : memref<4x8x1xf32, #tpu.memory_space<vmem>>, vector<4x8x1xf32>
    %39 = arith.mulf %34, %38 : vector<4x8x1xf32>
    %cst_30 = arith.constant dense<0.000000e+00> : vector<4x8xf32>
    %40 = vector.multi_reduction <add>, %37, %cst_30 [2] : vector<4x8x8xf32> to vector<4x8xf32>
    %41 = vector.shape_cast %40 : vector<4x8xf32> to vector<4x8x1xf32>
    %42 = arith.addf %39, %41 : vector<4x8x1xf32>
    %c0_31 = arith.constant 0 : index
    %c0_32 = arith.constant 0 : index
    %c0_33 = arith.constant 0 : index
    %43 = vector.load %arg17[%c0_31, %c0_32, %c0_33] : memref<4x8x1xf32, #tpu.memory_space<vmem>>, vector<4x8x1xf32>
    tpu.vector_store %arg17[%c0_31, %c0_32, %c0_33], %42 {strides = array<i32>} : memref<4x8x1xf32, #tpu.memory_space<vmem>>, vector<4x8x1xf32>,
    %c0_34 = arith.constant 0 : index
    %c0_35 = arith.constant 0 : index
    %c0_36 = arith.constant 0 : index
    %44 = vector.load %arg18[%c0_34, %c0_35, %c0_36] : memref<4x8x8xf32, #tpu.memory_space<vmem>>, vector<4x8x8xf32>
    %45 = vector.broadcast %34 : vector<4x8x1xf32> to vector<4x8x8xf32>
    %46 = arith.mulf %45, %44 : vector<4x8x8xf32>
    %47 = arith.truncf %37 : vector<4x8x8xf32> to vector<4x8x8xbf16>
    "tpu.trace_start"() <{level = 10 : i32, message = "hqk,hkd->hqd"}> : () -> ()
    %cst_37 = arith.constant dense<0.000000e+00> : vector<4x8x8xf32>
    %48 = tpu.matmul %47, %26, %cst_37 {dimension_numbers = #tpu.dot_dimension_numbers<[2], [1], [1], [2], [0, 0, 0, 1, 1, 2], [0], [0]>} : vector<4x8x8xbf16>, vector<4x8x8xbf16>, vector<4x8x8xf32> -> vector<4x8x8xf32>
    "tpu.trace_stop"() : () -> ()
    %49 = arith.addf %46, %48 : vector<4x8x8xf32>
    %c0_38 = arith.constant 0 : index
    %c0_39 = arith.constant 0 : index
    %c0_40 = arith.constant 0 : index
    %50 = vector.load %arg18[%c0_38, %c0_39, %c0_40] : memref<4x8x8xf32, #tpu.memory_space<vmem>>, vector<4x8x8xf32>
    tpu.vector_store %arg18[%c0_38, %c0_39, %c0_40], %49 {strides = array<i32>} : memref<4x8x8xf32, #tpu.memory_space<vmem>>, vector<4x8x8xf32>,
    %c0_41 = arith.constant 0 : index
    %c0_42 = arith.constant 0 : index
    %c0_43 = arith.constant 0 : index
    %51 = vector.load %arg16[%c0_41, %c0_42, %c0_43] : memref<4x8x1xf32, #tpu.memory_space<vmem>>, vector<4x8x1xf32>
    tpu.vector_store %arg16[%c0_41, %c0_42, %c0_43], %32 {strides = array<i32>} : memref<4x8x1xf32, #tpu.memory_space<vmem>>, vector<4x8x1xf32>,
    %c0_i32_44 = arith.constant 0 : i32
    %52 = arith.cmpi eq, %arg2, %c0_i32_44 : i32
    %53 = arith.extui %52 : i1 to i32
    %c0_i32_45 = arith.constant 0 : i32
    %54 = arith.cmpi ne, %53, %c0_i32_45 : i32
    scf.if %54 {
      %c0_46 = arith.constant 0 : index
      %c0_47 = arith.constant 0 : index
      %c0_48 = arith.constant 0 : index
      %55 = vector.load %arg17[%c0_46, %c0_47, %c0_48] : memref<4x8x1xf32, #tpu.memory_space<vmem>>, vector<4x8x1xf32>
      %56 = tpu.reciprocal %55 {approx = true} : vector<4x8x1xf32> -> vector<4x8x1xf32>
      %c0_49 = arith.constant 0 : index
      %c0_50 = arith.constant 0 : index
      %c0_51 = arith.constant 0 : index
      %57 = vector.load %arg18[%c0_49, %c0_50, %c0_51] : memref<4x8x8xf32, #tpu.memory_space<vmem>>, vector<4x8x8xf32>
      %58 = vector.broadcast %56 : vector<4x8x1xf32> to vector<4x8x8xf32>
      %59 = arith.mulf %57, %58 : vector<4x8x8xf32>
      %60 = arith.truncf %59 : vector<4x8x8xf32> to vector<4x8x8xbf16>
      %c0_52 = arith.constant 0 : index
      %c0_53 = arith.constant 0 : index
      %c0_54 = arith.constant 0 : index
      %61 = vector.load %arg12[%c0_52, %c0_53, %c0_54] : memref<4x8x32xbf16, #tpu.memory_space<vmem>>, vector<4x8x32xbf16>
      "tpu.trace_start"() <{level = 10 : i32, message = "hqd,hdD->hqD"}> : () -> ()
      %cst_55 = arith.constant dense<0.000000e+00> : vector<4x8x32xf32>
      %62 = tpu.matmul %60, %61, %cst_55 {dimension_numbers = #tpu.dot_dimension_numbers<[2], [1], [1], [2], [0, 0, 0, 1, 1, 2], [0], [0]>} : vector<4x8x8xbf16>, vector<4x8x32xbf16>, vector<4x8x32xf32> -> vector<4x8x32xf32>
      "tpu.trace_stop"() : () -> ()
      %cst_56 = arith.constant dense<0.000000e+00> : vector<8x32xf32>
      %63 = vector.multi_reduction <add>, %62, %cst_56 [0] : vector<4x8x32xf32> to vector<8x32xf32>
      %c0_57 = arith.constant 0 : index
      %c0_58 = arith.constant 0 : index
      %64 = vector.load %arg13[%c0_57, %c0_58] : memref<1x32xf32, #tpu.memory_space<vmem>>, vector<1x32xf32>
      %65 = vector.broadcast %64 : vector<1x32xf32> to vector<8x32xf32>
      %66 = arith.addf %63, %65 : vector<8x32xf32>
      %c0_59 = arith.constant 0 : index
      %c0_60 = arith.constant 0 : index
      %c0_61 = arith.constant 0 : index
      %67 = vector.load %arg14[%c0_59, %c0_60, %c0_61] : memref<1x8x32xf32, #tpu.memory_space<vmem>>, vector<1x8x32xf32>
      %68 = vector.shape_cast %67 : vector<1x8x32xf32> to vector<8x32xf32>
      %69 = vector.shape_cast %66 : vector<8x32xf32> to vector<1x8x32xf32>
      tpu.vector_store %arg14[%c0_59, %c0_60, %c0_61], %69 {strides = array<i32>} : memref<1x8x32xf32, #tpu.memory_space<vmem>>, vector<1x8x32xf32>,
    } else {
    }
    return
  }
  func.func @transform_0(%arg0: i32, %arg1: i32, %arg2: i32) -> (i32, i32, i32) {
    %c0_i32 = arith.constant 0 : i32
    %c0_i32_0 = arith.constant 0 : i32
    return %arg0, %arg1, %c0_i32 : i32, i32, i32
  }
  func.func @transform_1(%arg0: i32, %arg1: i32, %arg2: i32) -> (i32, i32, i32) {
    %c0_i32 = arith.constant 0 : i32
    %c0_i32_0 = arith.constant 0 : i32
    return %arg0, %arg2, %c0_i32 : i32, i32, i32
  }
  func.func @transform_2(%arg0: i32, %arg1: i32, %arg2: i32) -> (i32, i32, i32) {
    %c0_i32 = arith.constant 0 : i32
    %c0_i32_0 = arith.constant 0 : i32
    return %arg0, %arg2, %c0_i32 : i32, i32, i32
  }
  func.func @transform_3(%arg0: i32, %arg1: i32, %arg2: i32) -> (i32, i32, i32) {
    %c0_i32 = arith.constant 0 : i32
    %c0_i32_0 = arith.constant 0 : i32
    %c0_i32_1 = arith.constant 0 : i32
    %c0_i32_2 = arith.constant 0 : i32
    return %c0_i32, %c0_i32_0, %c0_i32_1 : i32, i32, i32
  }
  func.func @transform_4(%arg0: i32, %arg1: i32, %arg2: i32) -> (i32, i32, i32) {
    %c0_i32 = arith.constant 0 : i32
    %c0_i32_0 = arith.constant 0 : i32
    %c0_i32_1 = arith.constant 0 : i32
    %c0_i32_2 = arith.constant 0 : i32
    return %c0_i32, %c0_i32_0, %c0_i32_1 : i32, i32, i32
  }
  func.func @transform_5(%arg0: i32, %arg1: i32, %arg2: i32) -> (i32, i32, i32) {
    %c0_i32 = arith.constant 0 : i32
    %c0_i32_0 = arith.constant 0 : i32
    %c0_i32_1 = arith.constant 0 : i32
    %c0_i32_2 = arith.constant 0 : i32
    return %c0_i32, %c0_i32_0, %c0_i32_1 : i32, i32, i32
  }
  func.func @transform_6(%arg0: i32, %arg1: i32, %arg2: i32) -> (i32, i32, i32) {
    %c0_i32 = arith.constant 0 : i32
    %c0_i32_0 = arith.constant 0 : i32
    %c0_i32_1 = arith.constant 0 : i32
    %c0_i32_2 = arith.constant 0 : i32
    return %c0_i32, %c0_i32_0, %c0_i32_1 : i32, i32, i32
  }
  func.func @transform_7(%arg0: i32, %arg1: i32, %arg2: i32) -> (i32, i32, i32) {
    %c0_i32 = arith.constant 0 : i32
    %c0_i32_0 = arith.constant 0 : i32
    %c0_i32_1 = arith.constant 0 : i32
    %c0_i32_2 = arith.constant 0 : i32
    return %c0_i32, %c0_i32_0, %c0_i32_1 : i32, i32, i32
  }
  func.func @transform_8(%arg0: i32, %arg1: i32, %arg2: i32) -> (i32, i32, i32) {
    %c0_i32 = arith.constant 0 : i32
    %c0_i32_0 = arith.constant 0 : i32
    %c0_i32_1 = arith.constant 0 : i32
    %c0_i32_2 = arith.constant 0 : i32
    return %c0_i32, %c0_i32_0, %c0_i32_1 : i32, i32, i32
  }
  func.func @transform_9(%arg0: i32, %arg1: i32, %arg2: i32) -> (i32, i32, i32) {
    %c0_i32 = arith.constant 0 : i32
    %c0_i32_0 = arith.constant 0 : i32
    %c0_i32_1 = arith.constant 0 : i32
    %c0_i32_2 = arith.constant 0 : i32
    return %c0_i32, %c0_i32_0, %c0_i32_1 : i32, i32, i32
  }
  func.func @transform_10(%arg0: i32, %arg1: i32, %arg2: i32) -> (i32, i32) {
    %c0_i32 = arith.constant 0 : i32
    %c0_i32_0 = arith.constant 0 : i32
    %c0_i32_1 = arith.constant 0 : i32
    return %c0_i32, %c0_i32_0 : i32, i32
  }
  func.func @transform_11(%arg0: i32, %arg1: i32, %arg2: i32) -> (i32, i32, i32) {
    %c0_i32 = arith.constant 0 : i32
    %c0_i32_0 = arith.constant 0 : i32
    return %arg0, %arg1, %c0_i32 : i32, i32, i32
  }
}

</mosaic_0001>

<bundles_post_ra>
// kernel: tpu_custom_call.1
= control target key start
LH: loop header
LB: loop body
LE: loop exit
PB: predicated region body
PF: predicated region fallthrough
CT: control target
= control target key end

     0   :  { %16 = vsyncpa [#allocation7], 0  ;;  %s2198_s0 = inlined_call_operand.vmem [shape: f32[2,8,32], index: 0, kind: input, shape index: {}]   ;;  %s2199_s1 = inlined_call_operand.vmem [shape: f32[2,8,32], index: 1, kind: input, shape index: {}]   ;;  %s2200_s2 = inlined_call_operand.vmem [shape: f32[2,8,32], index: 2, kind: input, shape index: {}]   ;;  %s2201_s3 = inlined_call_operand.vmem [shape: bf16[4,32,8], index: 3, kind: input, shape index: {}]   ;;  %s2202_s4 = inlined_call_operand.vmem [shape: f32[4,1,8], index: 4, kind: input, shape index: {}]   ;;  %s2203_s5 = inlined_call_operand.vmem [shape: bf16[4,32,8], index: 5, kind: input, shape index: {}]   ;;  %s2204_s6 = inlined_call_operand.vmem [shape: f32[4,1,8], index: 6, kind: input, shape index: {}]   ;;  %s2205_s7 = inlined_call_operand.vmem [shape: bf16[4,32,8], index: 7, kind: input, shape index: {}]   ;;  %s2206_s8 = inlined_call_operand.vmem [shape: f32[4,1,8], index: 8, kind: input, shape index: {}]   ;;  %s2207_s9 = inlined_call_operand.vmem [shape: bf16[4,8,32], index: 9, kind: input, shape index: {}]   ;;  %s2208_s10 = inlined_call_operand.vmem [shape: f32[1,32], index: 10, kind: input, shape index: {}]   ;;  %s2209_s11 = inlined_call_operand.hbm [shape: f32[2,8,32], index: 11, kind: output, shape index: {}]  }
   0x1   :  { %18 = vsyncpa [#allocation7 + $0x1], 0  ;;  %s1869_s17 = smov 0   ;;  %s1871_s18 = smov 0  }
   0x2   :  { %s1873_s19 = smov 0   ;;  %s1875_s20 = smov 0  }
   0x3   :  { %s1877_s21 = smov 0   ;;  %s1879_s22 = smov 0  }
   0x4 LB: > { %2213 = sst [smem:[#allocation9_spill]] %s1792_s19  ;;  %s1471_s23 = sadd.s32 4294967295, %s1804_s22   ;;  %s1804_s22 = sphi %s1879_s22, %s24_s22   ;;  %s1800_s21 = sphi %s1877_s21, %s2222_s21   ;;  %s1796_s20 = sphi %s1875_s20, %s2221_s20   ;;  %s1792_s19 = sphi %s1873_s19, %s2220_s19   ;;  %s1788_s18 = sphi %s1871_s18, %s2224_s18   ;;  %s1784_s17 = sphi %s1869_s17, %s2223_s17  }
   0x5   : > { %2214 = sst [smem:[#allocation10_spill]] %s1800_s21  ;;  %s1472_s24 = sadd.s32 4294967294, %s1804_s22  }
   0x6   : > { %s43_s25 = sadd.s32 1, %s1800_s21  ;;  %s304_s26 = sadd.s32 1, %s1792_s19 }
   0x7   : > { %p45_p0 = scmp.ge.s32.totalorder %s43_s25, 2  ;;  %p314_p1 = scmp.ne.s32.totalorder %s1792_s19, %s1788_s18 }
   0x8   : > { %p315_p2 = scmp.eq.s32.totalorder %s1471_s23, 1  ;;  %p320_p3 = scmp.ne.s32.totalorder %s1788_s18, %s1784_s17 }
   0x9   : > { %s2226_s25 = smov (%p45_p0, %s43_s25), 0  ;;  %p321_p5 = scmp.eq.s32.totalorder %s1472_s24, 1 }
   0xa   : > { %2215 = sst [smem:[#allocation11_spill]] %s2226_s25  ;;  %p1909_p4 = por %p315_p2, %p314_p1 }
   0xb   : > { %s299_s28 = ssub.s32 %s1800_s21, %s2226_s25  ;;  %p1475_p6 = scmp.ge.s32.totalorder %s1804_s22, 1 }
   0xc   : > { %p302_p7 = scmp.eq.s32.totalorder %s299_s28, 0  ;;  %p1916_p8 = por %p321_p5, %p320_p3 }
   0xd   : > { %p393_p9 = scmp.lt.s32.totalorder %s1804_s22, 3 }
   0xe   : > { %s1922_s30 = scalar_select %p302_p7, %s1792_s19, %s304_s26  }
   0xf   : > { %p394_p10 = pnand %p1475_p6, %p393_p9 }
  0x10   : > { %2218 = sst [smem:[#allocation12_spill]] %s1922_s30  ;;  %p449_p11 = scmp.lt.s32.totalorder (!%p394_p10), %s1796_s20, 1 }
  0x11   : > { %397 = sbr.rel (%p394_p10) target bundleno = 946 (0x3b2), region = 64  ;;  %s1601_s23 = sshll.u32 (!%p394_p10), %s1796_s20, 3 }
  0x16   : > { %v1605_v0 = vld [vmem:[%s2201_s3 + $0x8] sm:$0xff]  ;;  %v1607_v1 = vld [vmem:[%s2201_s3 + $0x18] sm:$0xff]  ;;  %v1604_v3 = vld [vmem:[%s2201_s3] sm:$0xff]  ;;  %s450_s14 = scalar_select %p449_p11, %s1796_s20, 1  ;;  %vm521_vm0 = vcmask 261120   ;;  %vm617_vm1 = vcmask 60416  }
  0x17   : > { %v1609_v2 = vld [vmem:[%s2201_s3 + $0x28] sm:$0xff]  ;;  %531 = vmatpush.bf16.msra.mxu0 %v1605_v0  ;;  %556 = vmatpush.bf16.msra.mxu1 %v1607_v1  ;;  %v1606_v4 = vld [vmem:[%s2201_s3 + $0x10] sm:$0xff]  ;;  %v1611_v5 = vld [vmem:[%s2201_s3 + $0x38] sm:$0xff]  ;;  %vm631_vm2 = vcmask 64512   ;;  %vm1128_vm3 = vcmask 1043456   ;;  %vm622_vm4 = vcmask 7168  }
  0x18   : > { %581 = vmatpush.bf16.msra.mxu2 %v1609_v2  ;;  %v1608_v6 = vld [vmem:[%s2201_s3 + $0x20] sm:$0xff]  ;;  %v1613_v7 = vld [vmem:[%s2203_s5 + $0x8] sm:$0xff]  ;;  %606 = vmatpush.bf16.msra.mxu3 %v1611_v5  ;;  %s1950_s24 = sshll.u32 %s450_s14, 3  ;;  %v1610_v8 = vld [vmem:[%s2201_s3 + $0x30] sm:$0xff] }
  0x19   : > { %v1615_v9 = vld [vmem:[%s2203_s5 + $0x18] sm:$0xff]  ;;  %s455_s15 = scalar_lea.vmem %s2198_s0, %s1950_s24  ;;  %v1617_v10 = vld [vmem:[%s2203_s5 + $0x28] sm:$0xff]  ;;  %v1612_v12 = vld [vmem:[%s2203_s5] sm:$0xff]  ;;  %s462_s21 = scalar_lea.vmem %s2199_s1, %s1950_s24 }
  0x1a   : > { %v475_v11 = vld [vmem:[%s455_s15] sm:$0xff]  ;;  %v1614_v13 = vld [vmem:[%s2203_s5 + $0x10] sm:$0xff]  ;;  %v1619_v14 = vld [vmem:[%s2203_s5 + $0x38] sm:$0xff]  ;;  %s469_s25 = scalar_lea.vmem %s2200_s2, %s1950_s24 }
  0x1b   : > { %532 = vmatpush.bf16.msra.mxu0 %v1604_v3  ;;  %557 = vmatpush.bf16.msra.mxu1 %v1606_v4  ;;  %v476_v15 = vpack.c.bf16 %v475_v11, %v475_v11  ;;  %v1618_v16 = vld [vmem:[%s2203_s5 + $0x30] sm:$0xff]  ;;  %v1616_v17 = vld [vmem:[%s2203_s5 + $0x20] sm:$0xff]  ;;  %v1621_v20 = vld [vmem:[%s2205_s7 + $0x8] sm:$0xff] }
  0x1c   : > { %582 = vmatpush.bf16.msra.mxu2 %v1608_v6  ;;  %607 = vmatpush.bf16.msra.mxu3 %v1610_v8  ;;  %v636_v18 = vld [vmem:[%s462_s21] sm:$0xff]  ;;  %v1623_v24 = vld [vmem:[%s2205_s7 + $0x18] sm:$0xff]  ;;  %v1622_v25 = vld [vmem:[%s2205_s7 + $0x10] sm:$0xff]  ;;  %s446_s21 = sand.u32 1, %s1788_s18  }
  0x1d   : > { %v637_v19 = vpack.c.bf16 %v636_v18, %v636_v18  ;;  %v1620_v21 = vld [vmem:[%s2205_s7] sm:$0xff]  ;;  %v1625_v26 = vld [vmem:[%s2205_s7 + $0x28] sm:$0xff]  ;;  %v1627_v28 = vld [vmem:[%s2205_s7 + $0x38] sm:$0xff]  ;;  %s1476_s14 = sshll.u32 %s446_s21, 3  ;;  %s1351_s15 = scalar_lea.sflag [#allocation7], %s446_s21 }
  0x1e   : > { %1488 = vmatmul.msk.bf16.vlgmr.msra.gmra.mxu0 %vm521_vm0, %v476_v15  ;;  %1497 = vmatmul.msk.bf16.vlgmr.msra.gmra.mxu1 %vm521_vm0, %v476_v15  ;;  %v638_v22 = vld [vmem:[%s469_s25] sm:$0xff]  ;;  %v1626_v29 = vld [vmem:[%s2205_s7 + $0x30] sm:$0xff]  ;;  %s1362_s25 = scalar_lea.hbm %s2209_s11, %s1601_s23  ;;  %s448_s20 = scalar_lea.vmem [#allocation6], %s1476_s14 }
  0x1f   : > { %694 = vmatpush.bf16.msrb.mxu0 %v1613_v7  ;;  %719 = vmatpush.bf16.msrb.mxu1 %v1615_v9  ;;  %v639_v23 = vpack.c.bf16 %v638_v22, %v638_v22  ;;  %v1624_v27 = vld [vmem:[%s2205_s7 + $0x20] sm:$0xff]  ;;  %s1364_s12 = sshll.u32 %s448_s20, 4  ;;  %s1366_s13 = sshll.u32 %s1362_s25, 4  ;;  %s1365_s12 = int_to_ptr.vmem [resolvable:$true] %s1364_s12  ;;  %s1367_s13 = int_to_ptr.hbm [resolvable:$true] %s1366_s13 }
  0x20   : > { %1506 = vmatmul.msk.bf16.vlgmr.msra.gmra.mxu2 %vm521_vm0, %v476_v15  ;;  %769 = vmatpush.bf16.msrb.mxu3 %v1619_v14  ;;  %v1689_v30 = vld [vmem:[%s2202_s4] ss:$0 sm:$0xff]  ;;  %v1690_v31 = vld [vmem:[%s2202_s4 + $0x1] ss:$0 sm:$0xff]  ;;  %v1691_v38 = vld [vmem:[%s2202_s4 + $0x2] ss:$0 sm:$0xff] }
  0x21   : > { %1515 = vmatmul.msk.bf16.vlgmr.msra.gmra.mxu3 %vm521_vm0, %v476_v15  ;;  %744 = vmatpush.bf16.msrb.mxu2 %v1617_v10  ;;  %v1692_v39 = vld [vmem:[%s2202_s4 + $0x3] ss:$0 sm:$0xff]  ;;  %v1693_v48 = vld [vmem:[%s2204_s6] ss:$0 sm:$0xff]  ;;  %v1694_v49 = vld [vmem:[%s2204_s6 + $0x1] ss:$0 sm:$0xff] }
  0x22   : > { %v1695_v58 = vld [vmem:[%s2204_s6 + $0x2] ss:$0 sm:$0xff]  ;;  %v1696_v61 = vld [vmem:[%s2204_s6 + $0x3] ss:$0 sm:$0xff]  ;;  %v1697_v14 = vld [vmem:[%s2206_s8] ss:$0 sm:$0xff] }
  0x23   : > { %695 = vmatpush.bf16.msrb.mxu0 %v1612_v12  ;;  %720 = vmatpush.bf16.msrb.mxu1 %v1614_v13  ;;  %s1740_s16 = sshra.s32 %s1367_s13, 4  ;;  %s1746_s14 = scalar_lea.hbm %s2209_s11, 16  ;;  %s1741_s16 = int_to_ptr.hbm [resolvable:$true] %s1740_s16 }
  0x24   : > { %770 = vmatpush.bf16.msrb.mxu3 %v1618_v16  ;;  %s1742_s24 = scalar_lea.hbm %s1741_s16, 8  ;;  %p1747_p1 = scmp.lt.s32.totalorder %s1741_s16, %s2209_s11 }
  0x25   : > { %745 = vmatpush.bf16.msrb.mxu2 %v1616_v17  ;;  %p1743_p12 = scmp.ne.s32.totalorder %s1741_s16, %s1742_s24  ;;  %p1748_p2 = scmp.lt.s32.totalorder %s1746_s14, %s1742_s24 }
  0x27   : > { %833 = vmatpush.bf16.msra.mxu0 %v1621_v20  ;;  %858 = vmatpush.bf16.msra.mxu1 %v1623_v24  ;;  %p1744_p13 = pnand %p1743_p12, %p1909_p4  ;;  %p1749_p3 = por %p1748_p2, %p1747_p1 }
  0x28   : > { %908 = vmatpush.bf16.msra.mxu3 %v1627_v28 }
  0x29   : > { %883 = vmatpush.bf16.msra.mxu2 %v1625_v26  ;;  %v1699_v26 = vld [vmem:[%s2206_s8 + $0x2] ss:$0 sm:$0xff]  ;;  %p1745_p0 = pneg %p1744_p13 }
  0x2b   : > { %834 = vmatpush.bf16.msra.mxu0 %v1620_v21  ;;  %859 = vmatpush.bf16.msra.mxu1 %v1622_v25  ;;  %p1750_p5 = pnand %p1749_p3, %p1745_p0 }
  0x2c   : > { %909 = vmatpush.bf16.msra.mxu3 %v1626_v29  ;;  %v1700_v29 = vld [vmem:[%s2206_s8 + $0x3] ss:$0 sm:$0xff] }
  0x2d   : > { %884 = vmatpush.bf16.msra.mxu2 %v1624_v27 }
  0x2e   : > { %1524 = vmatmul.msk.bf16.vlgmr.msrb.gmra.mxu0 %vm521_vm0, %v637_v19  ;;  %1533 = vmatmul.msk.bf16.vlgmr.msrb.gmra.mxu1 %vm521_vm0, %v637_v19 }
  0x30   : > { %1542 = vmatmul.msk.bf16.vlgmr.msrb.gmra.mxu2 %vm521_vm0, %v637_v19 }
  0x31   : > { %1551 = vmatmul.msk.bf16.vlgmr.msrb.gmra.mxu3 %vm521_vm0, %v637_v19  ;;  %v1698_v19 = vld [vmem:[%s2206_s8 + $0x1] ss:$0 sm:$0xff] }
  0x3e   : > { %1560 = vmatmul.msk.bf16.vlgmr.msra.gmra.mxu0 %vm521_vm0, %v639_v23  ;;  %1569 = vmatmul.msk.bf16.vlgmr.msra.gmra.mxu1 %vm521_vm0, %v639_v23 }
  0x40   : > { %1578 = vmatmul.msk.bf16.vlgmr.msra.gmra.mxu2 %vm521_vm0, %v639_v23 }
  0x41   : > { %1587 = vmatmul.msk.bf16.vlgmr.msra.gmra.mxu3 %vm521_vm0, %v639_v23 }
  0x9b   : > { %v534_v32 = vpop.f32.mrf.mxu0  ;;  %v559_v33 = vpop.f32.mrf.mxu1 }
  0x9c   : > { %v535_v34 = vadd.f32 %v1689_v30, %v534_v32  ;;  %v560_v35 = vadd.f32 %v1690_v31, %v559_v33 }
  0x9e   : > { %v613_v36 = vpack.c.bf16 %v535_v34, %v535_v34  ;;  %v614_v37 = vpack.c.bf16 %v560_v35, %v560_v35 }
  0xa0   : > { %618 = vst.msk [vmem:[#allocation2] sm:$0xf] %vm617_vm1, %v613_v36 }
  0xa1   : > { %619 = vst.msk [vmem:[#allocation2 + $0x4] sm:$0xf] %vm617_vm1, %v614_v37 }
  0xa3   : > { %v584_v40 = vpop.f32.mrf.mxu2  ;;  %v536_v42 = vpop.f32.mrf.mxu0 }
  0xa4   : > { %v585_v41 = vadd.f32 %v1691_v38, %v584_v40  ;;  %v561_v43 = vpop.f32.mrf.mxu1  ;;  %v609_v44 = vpop.f32.mrf.mxu3  ;;  %v1806_v38 = vmov -inf  }
  0xa5   : > { %v610_v46 = vadd.f32 %v1692_v39, %v609_v44  ;;  %623 = vst.msk [vmem:[#allocation3] sm:$0xff] %vm622_vm4, %v1806_v38 }
  0xa6   : > { %v615_v45 = vpack.c.bf16 %v585_v41, %v585_v41  ;;  %624 = vst.msk [vmem:[#allocation3 + $0x8] sm:$0xff] %vm622_vm4, %v1806_v38 }
  0xa7   : > { %v616_v47 = vpack.c.bf16 %v610_v46, %v610_v46  ;;  %v919_v8 = vld [vmem:[#allocation2] sm:$0xf]  ;;  %625 = vst.msk [vmem:[#allocation3 + $0x10] sm:$0xff] %vm622_vm4, %v1806_v38 }
  0xa8   : > { %620 = vst.msk [vmem:[#allocation2 + $0x8] sm:$0xf] %vm617_vm1, %v615_v45  ;;  %v920_v5 = vld [vmem:[#allocation2 + $0x4] sm:$0xf] }
  0xa9   : > { %621 = vst.msk [vmem:[#allocation2 + $0xc] sm:$0xf] %vm617_vm1, %v616_v47 }
  0xaa   : > { %626 = vst.msk [vmem:[#allocation3 + $0x18] sm:$0xff] %vm622_vm4, %v1806_v38 }
  0xab   : > { %v586_v50 = vpop.f32.mrf.mxu2  ;;  %v697_v51 = vpop.f32.mrf.mxu0 }
  0xac   : > { %v722_v52 = vpop.f32.mrf.mxu1  ;;  %v698_v53 = vadd.f32 %v1693_v48, %v697_v51  ;;  %v611_v55 = vpop.f32.mrf.mxu3  ;;  %v1807_v51 = vmov 0  }
  0xad   : > { %v723_v54 = vadd.f32 %v1694_v49, %v722_v52  ;;  %1687 = vset.pattern.permute.xlu0 %v1807_v51  ;;  %1688 = vset.pattern.permute.xlu1 %v1807_v51  ;;  %v1808_v52 = vmov 0.0  }
  0xae   : > { %v776_v56 = vpack.c.bf16 %v698_v53, %v698_v53  ;;  %1686 = vset.pattern.permute.xlu2 %v1807_v51  ;;  %629 = vst.msk [vmem:[#allocation4 + $0x10] sm:$0xff] %vm622_vm4, %v1808_v52  ;;  %v2098_v53 = vld [vmem:[#allocation3] sm:$0xff] }
  0xaf   : > { %v777_v57 = vpack.c.bf16 %v723_v54, %v723_v54  ;;  %v921_v12 = vld [vmem:[#allocation2 + $0x8] sm:$0xf]  ;;  %627 = vst.msk [vmem:[#allocation4] sm:$0xff] %vm622_vm4, %v1808_v52 }
  0xb0   : > { %v928_v59 = vsel %vm631_vm2, %v776_v56, 0  ;;  %v922_v13 = vld [vmem:[#allocation2 + $0xc] sm:$0xf]  ;;  %628 = vst.msk [vmem:[#allocation4 + $0x8] sm:$0xff] %vm622_vm4, %v1808_v52 }
  0xb1   : > { %v947_v60 = vsel %vm631_vm2, %v777_v57, 0  ;;  %937 = vmatpush.bf16.xpose.msrb.mxu0 %v928_v59  ;;  %630 = vst.msk [vmem:[#allocation4 + $0x18] sm:$0xff] %vm622_vm4, %v1808_v52  ;;  %v2108_v57 = vld [vmem:[#allocation3 + $0x8] sm:$0xff] }
  0xb2   : > { %956 = vmatpush.bf16.xpose.msrb.mxu1 %v947_v60  ;;  %632 = vst.msk [vmem:[#allocation5] sm:$0xff] %vm631_vm2, %v1808_v52 }
  0xb3   : > { %v747_v62 = vpop.f32.mrf.mxu2  ;;  %v699_v0 = vpop.f32.mrf.mxu0  ;;  %633 = vst.msk [vmem:[#allocation5 + $0x8] sm:$0xff] %vm631_vm2, %v1808_v52 }
  0xb4   : > { %v748_v63 = vadd.f32 %v1695_v58, %v747_v62  ;;  %v724_v1 = vpop.f32.mrf.mxu1  ;;  %v772_v2 = vpop.f32.mrf.mxu3  ;;  %634 = vst.msk [vmem:[#allocation5 + $0x10] sm:$0xff] %vm631_vm2, %v1808_v52 }
  0xb5   : > { %v773_v4 = vadd.f32 %v1696_v61, %v772_v2  ;;  %635 = vst.msk [vmem:[#allocation5 + $0x18] sm:$0xff] %vm631_vm2, %v1808_v52  ;;  %v1002_v61 = vld [vmem:[#allocation3 + $0x10] sm:$0xff]  ;;  %v1003_v1 = vld [vmem:[#allocation3 + $0x18] sm:$0xff] }
  0xb6   : > { %v778_v3 = vpack.c.bf16 %v748_v63, %v748_v63 }
  0xb7   : > { %v779_v7 = vpack.c.bf16 %v773_v4, %v773_v4 }
  0xb8   : > { %v966_v6 = vsel %vm631_vm2, %v778_v3, 0  ;;  %1588 = vmatmul.msk.bf16.vlgmr.msrb.gmra.mxu0 %vm631_vm2, %v919_v8 }
  0xb9   : > { %975 = vmatpush.bf16.xpose.msrb.mxu2 %v966_v6  ;;  %v985_v9 = vsel %vm631_vm2, %v779_v7, 0  ;;  %1589 = vmatmul.msk.bf16.vlgmr.msrb.gmra.mxu1 %vm631_vm2, %v920_v5 }
  0xba   : > { %994 = vmatpush.bf16.xpose.msrb.mxu3 %v985_v9 }
  0xbb   : > { %v749_v10 = vpop.f32.mrf.mxu2  ;;  %v836_v15 = vpop.f32.mrf.mxu0 }
  0xbc   : > { %v774_v11 = vpop.f32.mrf.mxu3  ;;  %v837_v16 = vadd.f32 %v1697_v14, %v836_v15  ;;  %v861_v20 = vpop.f32.mrf.mxu1 }
  0xbd   : > { %v862_v22 = vadd.f32 %v1698_v19, %v861_v20 }
  0xbe   : > { %v915_v17 = vpack.c.bf16 %v837_v16, %v837_v16 }
  0xbf   : > { %v916_v23 = vpack.c.bf16 %v862_v22, %v862_v22 }
  0xc0   : > { %1590 = vmatmul.msk.bf16.vlgmr.msrb.gmra.mxu2 %vm631_vm2, %v921_v12  ;;  %v1130_v18 = vsel %vm1128_vm3, %v915_v17, 0 }
  0xc1   : > { %1591 = vmatmul.msk.bf16.vlgmr.msrb.gmra.mxu3 %vm631_vm2, %v922_v13  ;;  %1139 = vmatpush.bf16.msra.mxu0 %v1130_v18  ;;  %v1149_v24 = vsel %vm1128_vm3, %v916_v23, 0 }
  0xc2   : > { %1158 = vmatpush.bf16.msra.mxu1 %v1149_v24 }
  0xc3   : > { %v838_v21 = vpop.f32.mrf.mxu0  ;;  %v886_v27 = vpop.f32.mrf.mxu2 }
  0xc4   : > { %v863_v25 = vpop.f32.mrf.mxu1  ;;  %v887_v28 = vadd.f32 %v1699_v26, %v886_v27  ;;  %v911_v31 = vpop.f32.mrf.mxu3 }
  0xc5   : > { %v912_v33 = vadd.f32 %v1700_v29, %v911_v31 }
  0xc6   : > { %v917_v30 = vpack.c.bf16 %v887_v28, %v887_v28 }
  0xc7   : > { %v918_v34 = vpack.c.bf16 %v912_v33, %v912_v33 }
  0xc8   : > { %v1168_v32 = vsel %vm1128_vm3, %v917_v30, 0 }
  0xc9   : > { %1177 = vmatpush.bf16.msra.mxu2 %v1168_v32  ;;  %v1187_v36 = vsel %vm1128_vm3, %v918_v34, 0 }
  0xca   : > { %1196 = vmatpush.bf16.msra.mxu3 %v1187_v36 }
  0xcb   : > { %v888_v35 = vpop.f32.mrf.mxu2 }
  0xcc   : > { %v913_v37 = vpop.f32.mrf.mxu3 }
  0xcd   : > { %v1066_v37 = vld [vmem:[#allocation4 + $0x10] sm:$0xff] }
 0x135   : > { %v2080_v39 = vpop.f32.mrf.mxu0 }
 0x136   : > { %v2082_v40 = vpop.f32.mrf.mxu1  ;;  %v1004_v41 = vsel %vm631_vm2, %v2080_v39, -inf }
 0x137   : > { %1005 = vmax.xlane.f32.xlu1 %v1004_v41  ;;  %v1007_v42 = vsel %vm631_vm2, %v2082_v40, -inf  ;;  %v1067_v41 = vld [vmem:[#allocation4 + $0x18] sm:$0xff] }
 0x13d   : > { %v941_v43 = vpop.f32.mrf.mxu0 }
 0x13e   : > { %v960_v44 = vpop.f32.mrf.mxu1  ;;  %v1064_v43 = vld [vmem:[#allocation4] sm:$0xff] }
 0x13f   : > { %1008 = vmax.xlane.f32.xlu1 %v1007_v42 }
 0x143   : > { %v977_v45 = vpop.f32.mrf.mxu2 }
 0x144   : > { %v1010_v46 = vsel %vm631_vm2, %v977_v45, -inf  ;;  %v996_v47 = vpop.f32.mrf.mxu3 }
 0x145   : > { %1011 = vmax.xlane.f32.xlu0 %v1010_v46  ;;  %v1013_v48 = vsel %vm631_vm2, %v996_v47, -inf }
 0x14b   : > { %v979_v49 = vpop.f32.mrf.mxu2 }
 0x14c   : > { %v998_v50 = vpop.f32.mrf.mxu3 }
 0x14d   : > { %1014 = vmax.xlane.f32.xlu0 %v1013_v48  ;;  %v1065_v50 = vld [vmem:[#allocation4 + $0x8] sm:$0xff] }
 0x1aa   : > { %v1006_v54 = vpop.xlane.xlu1 %1005 }
 0x1ab   : > { %v2101_v55 = vmax.f32 %v2098_v53, %v1006_v54 }
 0x1ad   : > { %v1020_v56 = vsub.f32 %v2098_v53, %v2101_v55  ;;  %1210 = vst.msk [vmem:[#allocation3] sm:$0xff] %vm622_vm4, %v2101_v55  ;;  %1034 = vperm.xlu0 %1687, %v2101_v55  }
 0x1af   : > { %v1024_v32 = vmul.f32 1.442695, %v1020_v56 }
 0x1b2   : > { %v1009_v58 = vpop.xlane.xlu1 %1008 }
 0x1b3   : > { %v1017_v59 = vmax.f32 %v2108_v57, %v1009_v58 }
 0x1b5   : > { %v1021_v60 = vsub.f32 %v2108_v57, %v1017_v59  ;;  %1211 = vst.msk [vmem:[#allocation3 + $0x8] sm:$0xff] %vm622_vm4, %v1017_v59  ;;  %1039 = vperm.xlu1 %1688, %v1017_v59  }
 0x1b7   : > { %v1026_v34 = vmul.f32 1.442695, %v1021_v60 }
 0x1b8   : > { %v1012_v62 = vpop.xlane.xlu0 %1011 }
 0x1b9   : > { %v1018_v63 = vmax.f32 %v1002_v61, %v1012_v62  ;;  %v1095_v62 = vld [vmem:[#allocation5 + $0x10] sm:$0xff] }
 0x1bb   : > { %v1022_v0 = vsub.f32 %v1002_v61, %v1018_v63  ;;  %1212 = vst.msk [vmem:[#allocation3 + $0x10] sm:$0xff] %vm622_vm4, %v1018_v63  ;;  %1044 = vperm.xlu2 %1686, %v1018_v63  }
 0x1bd   : > { %v1028_v31 = vmul.f32 1.442695, %v1022_v0 }
 0x1c0   : > { %v1015_v2 = vpop.xlane.xlu0 %1014 }
 0x1c1   : > { %v1019_v3 = vmax.f32 %v1003_v1, %v1015_v2 }
 0x1c3   : > { %v1023_v4 = vsub.f32 %v1003_v1, %v1019_v3  ;;  %1213 = vst.msk [vmem:[#allocation3 + $0x18] sm:$0xff] %vm622_vm4, %v1019_v3  ;;  %1049 = vperm.xlu2 %1686, %v1019_v3  }
 0x1c5   : > { %v1030_v29 = vmul.f32 1.442695, %v1023_v4 }
 0x215   : > { %v1045_v5 = vpop.permute.xlu2 %1044 }
 0x216   : > { %v1054_v6 = vsub.f32 %v977_v45, %v1045_v5 }
 0x218   : > { %v1060_v7 = vmul.f32 1.442695, %v1054_v6  ;;  %v1096_v6 = vld [vmem:[#allocation5 + $0x18] sm:$0xff] }
 0x21a   : > { %1702 = vpow2.f32 %v1060_v7 }
 0x21d   : > { %v1050_v8 = vpop.permute.xlu2 %1049 }
 0x21e   : > { %v1055_v9 = vsub.f32 %v996_v47, %v1050_v8 }
 0x21f   : > { %v1035_v12 = vpop.permute.xlu0 %1034 }
 0x220   : > { %v1703_v10 = vpop.eup %1702  ;;  %v1062_v11 = vmul.f32 1.442695, %v1055_v9  ;;  %v1052_v14 = vsub.f32 %v2080_v39, %v1035_v12 }
 0x221   : > { %v1123_v13 = vpack.c.bf16 %v1703_v10, %v1703_v10  ;;  %v1078_v15 = vsel %vm631_vm2, %v1703_v10, 0.0  ;;  %v1093_v10 = vld [vmem:[#allocation5] sm:$0xff] }
 0x222   : > { %1704 = vpow2.f32 %v1062_v11  ;;  %1079 = vadd.xlane.f32.xlu2 %v1078_v15  ;;  %v1056_v16 = vmul.f32 1.442695, %v1052_v14 }
 0x223   : > { %1594 = vmatmul.msk.bf16.vlgmr.msra.gmra.mxu2 %vm631_vm2, %v1123_v13 }
 0x224   : > { %1706 = vpow2.f32 %v1056_v16 }
 0x227   : > { %v1040_v18 = vpop.permute.xlu1 %1039 }
 0x228   : > { %v1705_v17 = vpop.eup %1704  ;;  %v1053_v20 = vsub.f32 %v2082_v40, %v1040_v18 }
 0x229   : > { %v1124_v19 = vpack.c.bf16 %v1705_v17, %v1705_v17  ;;  %v1081_v21 = vsel %vm631_vm2, %v1705_v17, 0.0  ;;  %v1094_v17 = vld [vmem:[#allocation5 + $0x8] sm:$0xff] }
 0x22a   : > { %1082 = vadd.xlane.f32.xlu1 %v1081_v21  ;;  %v1707_v22 = vpop.eup %1706  ;;  %v1058_v23 = vmul.f32 1.442695, %v1053_v20  ;;  %v1260_v21 = vld [vmem:[%s2207_s9 + $0xc] sm:$0xf] }
 0x22b   : > { %1595 = vmatmul.msk.bf16.vlgmr.msra.gmra.mxu3 %vm631_vm2, %v1124_v19  ;;  %v1121_v24 = vpack.c.bf16 %v1707_v22, %v1707_v22  ;;  %v1072_v25 = vsel %vm631_vm2, %v1707_v22, 0.0  ;;  %v1322_v22 = vsel %vm1128_vm3, %v1260_v21, 0 }
 0x22c   : > { %1708 = vpow2.f32 %v1058_v23  ;;  %1073 = vadd.xlane.f32.xlu0 %v1072_v25  ;;  %1331 = vmatpush.bf16.msrb.mxu3 %v1322_v22  ;;  %v1258_v23 = vld [vmem:[%s2207_s9 + $0x4] sm:$0xf]  ;;  %v1259_v25 = vld [vmem:[%s2207_s9 + $0x8] sm:$0xf] }
 0x22d   : > { %1592 = vmatmul.msk.bf16.vlgmr.msra.gmra.mxu0 %vm631_vm2, %v1121_v24  ;;  %1710 = vpow2.f32 %v1030_v29  ;;  %v1284_v24 = vsel %vm1128_vm3, %v1258_v23, 0 }
 0x22e   : > { %1712 = vpow2.f32 %v1028_v31  ;;  %1293 = vmatpush.bf16.msrb.mxu1 %v1284_v24 }
 0x22f   : > { %1714 = vpow2.f32 %v1024_v32 }
 0x230   : > { %1716 = vpow2.f32 %v1026_v34 }
 0x232   : > { %v1709_v26 = vpop.eup %1708 }
 0x233   : > { %v1122_v27 = vpack.c.bf16 %v1709_v26, %v1709_v26  ;;  %v1075_v28 = vsel %vm631_vm2, %v1709_v26, 0.0  ;;  %v1711_v30 = vpop.eup %1710  ;;  %v1303_v26 = vsel %vm1128_vm3, %v1259_v25, 0 }
 0x234   : > { %1076 = vadd.xlane.f32.xlu2 %v1075_v28  ;;  %v1713_v33 = vpop.eup %1712  ;;  %v1071_v42 = vmul.f32 %v1711_v30, %v1067_v41  ;;  %1312 = vmatpush.bf16.msrb.mxu2 %v1303_v26 }
 0x235   : > { %1593 = vmatmul.msk.bf16.vlgmr.msra.gmra.mxu1 %vm631_vm2, %v1122_v27  ;;  %v1715_v35 = vpop.eup %1714  ;;  %v1070_v38 = vmul.f32 %v1713_v33, %v1066_v37  ;;  %v1257_v27 = vld [vmem:[%s2207_s9] sm:$0xf] }
 0x236   : > { %v1717_v36 = vpop.eup %1716  ;;  %v1068_v46 = vmul.f32 %v1715_v35, %v1064_v43  ;;  %v1265_v28 = vsel %vm1128_vm3, %v1257_v27, 0 }
 0x237   : > { %v1069_v53 = vmul.f32 %v1717_v36, %v1065_v50  ;;  %1274 = vmatpush.bf16.msrb.mxu0 %v1265_v28 }
 0x243   : > { %1114 = vperm.xlu1 %1688, %v1711_v30  }
 0x24c   : > { %1109 = vperm.xlu2 %1686, %v1713_v33  }
 0x254   : > { %1099 = vperm.xlu2 %1686, %v1715_v35  }
 0x25c   : > { %1104 = vperm.xlu2 %1686, %v1717_v36  }
 0x295   : > { %v1080_v39 = vpop.xlane.xlu2 %1079 }
 0x296   : > { %v1086_v40 = vadd.f32 %v1080_v39, %v1070_v38 }
 0x298   : > { %1091 = vst.msk [vmem:[#allocation4 + $0x10] sm:$0xff] %vm622_vm4, %v1086_v40 }
 0x29d   : > { %v1083_v44 = vpop.xlane.xlu1 %1082 }
 0x29e   : > { %v1087_v45 = vadd.f32 %v1083_v44, %v1071_v42 }
 0x29f   : > { %v1219_v47 = vld [vmem:[#allocation4 + $0x10] sm:$0xff]  ;;  %v1074_v48 = vpop.xlane.xlu0 %1073 }
 0x2a0   : > { %1092 = vst.msk [vmem:[#allocation4 + $0x18] sm:$0xff] %vm622_vm4, %v1087_v45  ;;  %1718 = vrcp.f32 %v1219_v47  ;;  %v1084_v49 = vadd.f32 %v1074_v48, %v1068_v46 }
 0x2a2   : > { %1089 = vst.msk [vmem:[#allocation4] sm:$0xff] %vm622_vm4, %v1084_v49 }
 0x2a6   : > { %v1719_v51 = vpop.eup %1718  ;;  %v1179_v52 = vpop.f32.mrf.mxu2 }
 0x2a7   : > { %1241 = vperm.xlu0 %1687, %v1719_v51   ;;  %v1220_v54 = vld [vmem:[#allocation4 + $0x18] sm:$0xff]  ;;  %v1077_v55 = vpop.xlane.xlu2 %1076 }
 0x2a8   : > { %1720 = vrcp.f32 %v1220_v54  ;;  %v1085_v56 = vadd.f32 %v1077_v55, %v1069_v53 }
 0x2a9   : > { %v1217_v57 = vld [vmem:[#allocation4] sm:$0xff] }
 0x2aa   : > { %1090 = vst.msk [vmem:[#allocation4 + $0x8] sm:$0xff] %vm622_vm4, %v1085_v56  ;;  %v1141_v58 = vpop.f32.mrf.mxu0  ;;  %1722 = vrcp.f32 %v1217_v57  ;;  %v1701_v57 = vld [vmem:[%s2208_s10] ss:$0 sm:$0xff] }
 0x2ae   : > { %v1721_v59 = vpop.eup %1720  ;;  %v1181_v60 = vpop.f32.mrf.mxu2 }
 0x2af   : > { %v1198_v61 = vpop.f32.mrf.mxu3  ;;  %1246 = vperm.xlu2 %1686, %v1721_v59   ;;  %v1110_v63 = vpop.permute.xlu2 %1109 }
 0x2b0   : > { %v1723_v0 = vpop.eup %1722  ;;  %v1119_v1 = vmul.f32 %v1110_v63, %v1095_v62 }
 0x2b1   : > { %1231 = vperm.xlu1 %1688, %v1723_v0   ;;  %v1218_v2 = vld [vmem:[#allocation4 + $0x8] sm:$0xff] }
 0x2b2   : > { %v1204_v3 = vadd.f32 %v1179_v52, %v1119_v1  ;;  %v1143_v4 = vpop.f32.mrf.mxu0  ;;  %v1160_v5 = vpop.f32.mrf.mxu1  ;;  %1724 = vrcp.f32 %v1218_v2 }
 0x2b4   : > { %1208 = vst.msk [vmem:[#allocation5 + $0x10] sm:$0xff] %vm631_vm2, %v1204_v3 }
 0x2b5   : > { %v1115_v7 = vpop.permute.xlu1 %1114 }
 0x2b6   : > { %v1120_v8 = vmul.f32 %v1115_v7, %v1096_v6 }
 0x2b7   : > { %v1200_v9 = vpop.f32.mrf.mxu3  ;;  %v1100_v12 = vpop.permute.xlu2 %1099 }
 0x2b8   : > { %v1205_v11 = vadd.f32 %v1198_v61, %v1120_v8  ;;  %v1725_v13 = vpop.eup %1724  ;;  %v1117_v14 = vmul.f32 %v1100_v12, %v1093_v10 }
 0x2b9   : > { %1236 = vperm.xlu2 %1686, %v1725_v13  }
 0x2ba   : > { %1209 = vst.msk [vmem:[#allocation5 + $0x18] sm:$0xff] %vm631_vm2, %v1205_v11  ;;  %v1202_v15 = vadd.f32 %v1141_v58, %v1117_v14  ;;  %v1162_v16 = vpop.f32.mrf.mxu1 }
 0x2bb   : > { %v1227_v38 = vld [vmem:[#allocation5 + $0x10] sm:$0xff] }
 0x2bc   : > { %1206 = vst.msk [vmem:[#allocation5] sm:$0xff] %vm631_vm2, %v1202_v15 }
 0x2bf   : > { %v1105_v18 = vpop.permute.xlu2 %1104 }
 0x2c0   : > { %v1118_v19 = vmul.f32 %v1105_v18, %v1094_v17 }
 0x2c1   : > { %v1228_v29 = vld [vmem:[#allocation5 + $0x18] sm:$0xff] }
 0x2c2   : > { %v1203_v20 = vadd.f32 %v1160_v5, %v1118_v19 }
 0x2c3   : > { %v1225_v42 = vld [vmem:[#allocation5] sm:$0xff] }
 0x2c4   : > { %1207 = vst.msk [vmem:[#allocation5 + $0x8] sm:$0xff] %vm631_vm2, %v1203_v20 }
 0x2cb   : > { %v1226_v33 = vld [vmem:[#allocation5 + $0x8] sm:$0xff] }
 0x309   : > { %v1247_v30 = vpop.permute.xlu2 %1246 }
 0x30a   : > { %v1252_v31 = vmul.f32 %v1247_v30, %v1228_v29 }
 0x30c   : > { %v1256_v32 = vpack.c.bf16 %v1252_v31, %v1252_v31 }
 0x30e   : > { %1599 = vmatmul.msk.bf16.vlgmr.msrb.gmra.mxu3 %vm631_vm2, %v1256_v32 }
 0x313   : > { %v1237_v34 = vpop.permute.xlu2 %1236 }
 0x314   : > { %v1250_v35 = vmul.f32 %v1237_v34, %v1226_v33 }
 0x316   : > { %v1254_v36 = vpack.c.bf16 %v1250_v35, %v1250_v35 }
 0x318   : > { %1597 = vmatmul.msk.bf16.vlgmr.msrb.gmra.mxu1 %vm631_vm2, %v1254_v36 }
 0x319   : > { %v1242_v37 = vpop.permute.xlu0 %1241 }
 0x31a   : > { %v1251_v39 = vmul.f32 %v1242_v37, %v1227_v38 }
 0x31c   : > { %v1255_v40 = vpack.c.bf16 %v1251_v39, %v1251_v39 }
 0x31e   : > { %1598 = vmatmul.msk.bf16.vlgmr.msrb.gmra.mxu2 %vm631_vm2, %v1255_v40 }
 0x323   : > { %v1232_v41 = vpop.permute.xlu1 %1231 }
 0x324   : > { %v1249_v43 = vmul.f32 %v1232_v41, %v1225_v42 }
 0x326   : > { %v1253_v44 = vpack.c.bf16 %v1249_v43, %v1249_v43 }
 0x328   : > { %1596 = vmatmul.msk.bf16.vlgmr.msrb.gmra.mxu0 %vm631_vm2, %v1253_v44 }
 0x391   : > { %v1333_v45 = vpop.f32.mrf.mxu3 }
 0x392   : > { %v1342_v58 = vsel %vm521_vm0, %v1333_v45, 0.0 }
 0x395   : > { %v1295_v46 = vpop.f32.mrf.mxu1 }
 0x396   : > { %v1338_v51 = vsel %vm521_vm0, %v1295_v46, 0.0 }
 0x399   : > { %v1335_v47 = vpop.f32.mrf.mxu3 }
 0x39d   : > { %v1297_v48 = vpop.f32.mrf.mxu1 }
 0x3a1   : > { %v1314_v49 = vpop.f32.mrf.mxu2 }
 0x3a2   : > { %v1340_v54 = vsel %vm521_vm0, %v1314_v49, 0.0 }
 0x3a5   : > { %v1276_v50 = vpop.f32.mrf.mxu0 }
 0x3a6   : > { %v1337_v52 = vsel %vm521_vm0, %v1276_v50, 0.0 }
 0x3a7   : > { %v1339_v53 = vadd.f32 %v1338_v51, %v1337_v52 }
 0x3a9   : > { %v1316_v55 = vpop.f32.mrf.mxu2  ;;  %v1341_v56 = vadd.f32 %v1340_v54, %v1339_v53 }
 0x3ab   : > { %v1343_v59 = vadd.f32 %v1342_v58, %v1341_v56 }
 0x3ad   : > { %v1348_v60 = vadd.f32 %v1701_v57, %v1343_v59  ;;  %v1278_v61 = vpop.f32.mrf.mxu0 }
 0x3af   : > { %1349 = vst.msk [vmem:[%s448_s20] sm:$0xff] %vm521_vm0, %v1348_v60 }
 0x3b0   : > { %1753 = shalt.err (!%p1750_p5)
}
 0x3b1   : > { %1628 = dma.vmem_to_hbm [thread:$0]  (%p1909_p4), %s1365_s12, 128, %s1367_s13, %s1351_s15  }
 0x3b2 PF: > { %p1634_p6 = scmp.ge.s32.totalorder %s1804_s22, 2  ;;  %s1378_s21 = sand.u32 1, %s1784_s17  }
 0x3b3   : > { %s1379_s19 = scalar_lea.sflag [#allocation7], %s1378_s21 }
 0x3b4   : > { %p1631_p7 = pnand %p1634_p6, %p1916_p8 }
 0x3b6   : > { %p1632_p9 = pneg %p1631_p7 }
 0x3b8   : > { %1779 = dma.done.wait (%p1632_p9), %s1379_s19, 128  }
 0x3b9   : > { %1781 = vsyncadd (%p1632_p9), %s1379_s19, 4294967168  ;;  %s24_s22 = sadd.s32 1, %s1804_s22   ;;  %s2219_s30 = sld [smem:[#allocation9_spill]] }
 0x3ba   : > { %p21_p10 = scmp.ge.s32.totalorder %s24_s22, 4   ;;  %s2220_s19 = sld [smem:[#allocation12_spill]] }
 0x3bb   : > { %s2221_s20 = sld [smem:[#allocation10_spill]]  ;;  %s2223_s17 = smov %s1788_s18 }
 0x3bc   : > { %s2222_s21 = sld [smem:[#allocation11_spill]]  ;;  %23 = sbr.rel (!%p21_p10) target bundleno = 4 (0x4), region = 113 }
 0x3bf   : > { %s2224_s18 = smov %s2219_s30 }
 0x3c1   :  { %1385 = vsyncpa [#allocation7], 1 }
 0x3c2   :  { %1387 = vsyncpa [#allocation7 + $0x1], 1 }

</bundles_post_ra>
